<compile_context>
chip_gen: v5e
topology: v5e:2x2
jax: 0.10.0
libtpu: 0.0.40
codegen_flags: <defaults>
</compile_context>

<pallas_src>
import functools
import math

import numpy as np
import jax
import jax.numpy as jnp
from jax import lax
from jax.experimental import pallas as pl
from jax.experimental.pallas import tpu as pltpu


def _pos_encoding_kernel(*refs, fold):
    """Writes one (TS, 2*half) block: [:, :half] = sin(x), [:, half:] = cos(x).

    x[r, g*pairs + j] = (fold * (block_row0 + r) + g) * w_j, i.e. `fold`
    consecutive positions are packed along the lane axis of each kernel row.
    """
    if fold > 1:
        w_ref, g_ref, o_ref = refs
    else:
        w_ref, o_ref = refs
        g_ref = None

    ts, c = o_ref.shape
    half = c // 2

    # Exact integer position base for this tile (int32 math, single cast).
    row0 = pl.program_id(0) * ts
    rows = lax.broadcasted_iota(jnp.int32, (ts, 1), 0)
    base = ((row0 + rows) * fold).astype(jnp.float32)          # (ts, 1)

    if g_ref is not None:
        pos = base + g_ref[...]                                # (ts, half)
    else:
        pos = base                                             # lane-broadcast in the mul
    x = pos * w_ref[...]                                       # (ts, half) angles

    # One VPU trig polynomial per output element; cos computed directly
    # (no sin(x + pi/2) fold).  Both slab widths are multiples of 128 lanes,
    # so these are unmasked full-vreg stores.
    o_ref[:, :half] = jnp.sin(x)
    o_ref[:, half:] = jnp.cos(x)


def _pick_tile_rows(n_rows, n_cols, requested=None):
    """Row-tile size: ~<=2 MiB per output block, multiple of 8 (8,128 rule)."""
    if requested is None:
        budget = 2 * 1024 * 1024                 # review: 2-4 MiB per block
        requested = max(8, budget // (4 * n_cols))
        requested = min(requested, 1024)
    ts = max(8, (requested // 8) * 8)
    return n_rows if ts >= n_rows else ts


@functools.lru_cache(maxsize=None)
def pos_encoding(seq_len, hidden, maxlen, tile_rows=None):
    """Pallas equivalent of PosEncoding(config).forward(seq_len).

    The result is cached (pure function of its static arguments), so repeated
    forward passes pay the kernel cost once.
    """
    pairs = maxlen // 2                 # number of (sin, cos) column pairs
    if 2 * pairs > hidden:
        # The PyTorch reference would index out of bounds for this config.
        raise ValueError("2*(position_encoding_maxlen//2) must be <= hidden")
    if seq_len > (1 << 24):
        # Positions are only exact in f32 below 2**24 (review note).
        raise ValueError("seq_len too large for exact f32 positions")
    if pairs == 0 or seq_len == 0:
        return jnp.zeros((seq_len, hidden), jnp.float32)

    # Fold k consecutive positions into one kernel row so each of the sin/cos
    # slabs (width k*pairs) is a multiple of 128 lanes -> lane-dense stores.
    k = 128 // math.gcd(pairs, 128)
    half = k * pairs
    c = 2 * half
    r = -(-seq_len // k)                # folded rows (ceil)

    # Host-side precompute of per-column constants (exact f64 pow, cast to f32).
    j = np.arange(pairs)
    w_pair = np.power(10000.0, -2.0 * j / hidden)
    w_row = np.tile(w_pair, k).astype(np.float32).reshape(1, half)
    args = [jnp.asarray(w_row)]
    row_spec = pl.BlockSpec((1, half), lambda i: (0, 0))
    in_specs = [row_spec]
    if k > 1:
        # Per-lane integer group offset (0..k-1), added to the integer base
        # position BEFORE the frequency multiply (keeps positions exact).
        g_row = np.repeat(np.arange(k, dtype=np.float32), pairs).reshape(1, half)
        args.append(jnp.asarray(g_row))
        in_specs.append(row_spec)

    ts = _pick_tile_rows(r, c, tile_rows)
    grid = (pl.cdiv(r, ts),)

    total = r * c
    cost = pl.CostEstimate(
        flops=8 * total,                # range reduction + poly arithmetic (rough)
        transcendentals=total,          # one sin/cos per output element
        bytes_accessed=4 * (total + 2 * half),
    )

    folded = pl.pallas_call(
        functools.partial(_pos_encoding_kernel, fold=k),
        out_shape=jax.ShapeDtypeStruct((r, c), jnp.float32),
        grid=grid,
        in_specs=in_specs,
        out_specs=pl.BlockSpec((ts, c), lambda i: (i, 0)),
        compiler_params=pltpu.CompilerParams(
            # On v7x, consider (pltpu.CORE_PARALLEL,) if one TC sits idle.
            dimension_semantics=("parallel",),
            vmem_limit_bytes=32 * 1024 * 1024,   # headroom for trig temporaries
        ),
        cost_estimate=cost,
    )(*args)

    # Wrapper-side layout plumbing (outside the kernel): unfold rows,
    # interleave the sin/cos slabs into (..., 2j, 2j+1) column order,
    # trim the row padding and append the constant-zero columns.
    table = (
        folded.reshape(r, 2, k, pairs)
        .transpose(0, 2, 3, 1)
        .reshape(r * k, 2 * pairs)
    )
    table = table[:seq_len]
    if 2 * pairs < hidden:
        table = jnp.pad(table, ((0, 0), (0, hidden - 2 * pairs)))
    return table


def _reference(seq_len, hidden, maxlen):
    out = np.zeros((seq_len, hidden), dtype=np.float32)
    for pos in range(seq_len):
        for i in range(maxlen // 2):
            out[pos, 2 * i] = math.sin(pos / math.pow(10000.0, 2 * i / hidden))
            out[pos, 2 * i + 1] = math.cos(pos / math.pow(10000.0, 2 * i / hidden))
    return out


if __name__ == "__main__":
    # Config analogous to the PyTorch module's config object.  The module has
    # no learned parameters and no tensor inputs (forward takes an int), so
    # the PRNGKey is created only for protocol consistency (unused).
    _ = jax.random.PRNGKey(0)

    # 1) Demo config: seq=8, hidden=32, maxlen=32 (folded lane-dense path, k=8).
    out = jax.block_until_ready(pos_encoding(8, 32, 32))
    np.testing.assert_allclose(np.asarray(out), _reference(8, 32, 32),
                               rtol=1e-5, atol=1e-5)

    # 2) Unfilled (zero) columns: hidden=128, maxlen=64 -> 64 zero columns.
    out2 = jax.block_until_ready(pos_encoding(40, 128, 64))
    np.testing.assert_allclose(np.asarray(out2), _reference(40, 128, 64),
                               rtol=1e-5, atol=1e-5)

    # 3) Multi-tile grid with a partial last block (R=18 folded rows, TS=8).
    #    Slightly looser tolerance: f32 angle rounding grows with position.
    out3 = jax.block_until_ready(pos_encoding(72, 64, 64, tile_rows=8))
    np.testing.assert_allclose(np.asarray(out3), _reference(72, 64, 64),
                               rtol=1e-5, atol=5e-5)

    # 4) Odd hidden size with a trailing zero column.
    out4 = jax.block_until_ready(pos_encoding(9, 33, 32))
    np.testing.assert_allclose(np.asarray(out4), _reference(9, 33, 32),
                               rtol=1e-5, atol=1e-5)

    print("KERNEL_OK")
</pallas_src>

<mosaic_0001>
module attributes {stable_mosaic.version = 11 : i64} {
  func.func @_pos_encoding_kernel(%arg0: i32, %arg1: memref<1x128xf32, #tpu.memory_space<vmem>>, %arg2: memref<1x128xf32, #tpu.memory_space<vmem>>, %arg3: memref<1x256xf32, #tpu.memory_space<vmem>>) attributes {dimension_semantics = [#tpu.dimension_semantics<parallel>], iteration_bounds = array<i64: 1>, scalar_prefetch = 0 : i64, scratch_operands = 0 : i64, tpu.core_type = #tpu.core_type<tc>, window_params = [{pipeline_mode = #tpu.pipeline_mode<synchronous>, transform_indices = @transform_0, window_bounds = array<i64: 1, 128>}, {pipeline_mode = #tpu.pipeline_mode<synchronous>, transform_indices = @transform_1, window_bounds = array<i64: 1, 128>}, {transform_indices = @transform_2, window_bounds = array<i64: 1, 256>}]} {
    %c1_i32 = arith.constant 1 : i32
    %0 = arith.muli %arg0, %c1_i32 : i32
    %1 = tpu.iota {dimensions = array<i32: 0>} : vector<1x1xi32>
    %2 = vector.broadcast %0 : i32 to vector<1x1xi32>
    %3 = arith.addi %2, %1 : vector<1x1xi32>
    %c8_i32 = arith.constant 8 : i32
    %4 = vector.broadcast %c8_i32 : i32 to vector<1x1xi32>
    %5 = arith.muli %3, %4 : vector<1x1xi32>
    %6 = arith.sitofp %5 : vector<1x1xi32> to vector<1x1xf32>
    %c0 = arith.constant 0 : index
    %c0_0 = arith.constant 0 : index
    %7 = vector.load %arg2[%c0, %c0_0] : memref<1x128xf32, #tpu.memory_space<vmem>>, vector<1x128xf32>
    %8 = vector.broadcast %6 : vector<1x1xf32> to vector<1x128xf32>
    %9 = arith.addf %8, %7 : vector<1x128xf32>
    %c0_1 = arith.constant 0 : index
    %c0_2 = arith.constant 0 : index
    %10 = vector.load %arg1[%c0_1, %c0_2] : memref<1x128xf32, #tpu.memory_space<vmem>>, vector<1x128xf32>
    %11 = arith.mulf %9, %10 : vector<1x128xf32>
    %12 = math.sin %11 : vector<1x128xf32>
    %c0_3 = arith.constant 0 : index
    %c0_4 = arith.constant 0 : index
    %13 = vector.load %arg3[%c0_3, %c0_4] : memref<1x256xf32, #tpu.memory_space<vmem>>, vector<1x128xf32>
    tpu.vector_store %arg3[%c0_3, %c0_4], %12 {strides = array<i32>} : memref<1x256xf32, #tpu.memory_space<vmem>>, vector<1x128xf32>,
    %14 = math.cos %11 : vector<1x128xf32>
    %c0_5 = arith.constant 0 : index
    %c128 = arith.constant 128 : index
    %15 = vector.load %arg3[%c0_5, %c128] : memref<1x256xf32, #tpu.memory_space<vmem>>, vector<1x128xf32>
    tpu.vector_store %arg3[%c0_5, %c128], %14 {strides = array<i32>} : memref<1x256xf32, #tpu.memory_space<vmem>>, vector<1x128xf32>,
    return
  }
  func.func @transform_0(%arg0: i32) -> (i32, i32) {
    %c0_i32 = arith.constant 0 : i32
    %c0_i32_0 = arith.constant 0 : i32
    %c0_i32_1 = arith.constant 0 : i32
    return %c0_i32, %c0_i32_0 : i32, i32
  }
  func.func @transform_1(%arg0: i32) -> (i32, i32) {
    %c0_i32 = arith.constant 0 : i32
    %c0_i32_0 = arith.constant 0 : i32
    %c0_i32_1 = arith.constant 0 : i32
    return %c0_i32, %c0_i32_0 : i32, i32
  }
  func.func @transform_2(%arg0: i32) -> (i32, i32) {
    %c0_i32 = arith.constant 0 : i32
    %c0_i32_0 = arith.constant 0 : i32
    return %arg0, %c0_i32 : i32, i32
  }
}

</mosaic_0001>

<bundles_post_ra>
// kernel: tpu_custom_call.1
= control target key start
LH: loop header
LB: loop body
LE: loop exit
PB: predicated region body
PF: predicated region fallthrough
CT: control target
= control target key end

     0   :  { %7 = vsyncpa [#allocation3], 0  ;;  %s559_s0 = inlined_call_operand.hbm [shape: f32[1,128], index: 0, kind: input, shape index: {}]   ;;  %s560_s1 = inlined_call_operand.hbm [shape: f32[1,128], index: 1, kind: input, shape index: {}]   ;;  %s561_s2 = inlined_call_operand.hbm [shape: f32[1,256], index: 2, kind: output, shape index: {}]  }
   0x1   :  { %8 = vsyncpa [#allocation6], 0 }
   0x2   :  { %9 = vsyncpa [#allocation4], 0  ;;  %s15_s11 = sshll.u32 %s559_s0, 4  ;;  %s477_s12 = smov [#allocation2]   ;;  %s16_s11 = int_to_ptr.hbm [resolvable:$true] %s15_s11 }
   0x3   :  { %s17_s13 = sshll.u32 %s477_s12, 4  ;;  %s26_s16 = sshll.u32 %s560_s1, 4  ;;  %s18_s13 = int_to_ptr.vmem [resolvable:$true] %s17_s13  ;;  %s27_s16 = int_to_ptr.hbm [resolvable:$true] %s26_s16 }
   0x4   :  { %20 = dma.hbm_to_vmem [thread:$0]  %s16_s11, 16, %s18_s13, [#allocation3]  }
   0x5   :  { %s478_s17 = smov [#allocation5]  }
   0x6   :  { %s28_s18 = sshll.u32 %s478_s17, 4  ;;  %s29_s18 = int_to_ptr.vmem [resolvable:$true] %s28_s18 }
   0x7   :  { %31 = dma.hbm_to_vmem [thread:$0]  %s27_s16, 16, %s29_s18, [#allocation6]  }
   0x8   :  { %471 = dma.done.wait [#allocation3], 16  }
   0x9   :  { %472 = vsyncadd [#allocation3], 4294967280 }
   0xa   :  { %473 = dma.done.wait [#allocation6], 16  }
   0xb   :  { %474 = vsyncadd [#allocation6], 4294967280  ;;  %v40_v0 = vlaneseq  ;;  %v46_v4 = vld [vmem:[#allocation5] sm:$0x1]  ;;  %v48_v5 = vld [vmem:[#allocation2] sm:$0x1] }
   0xc   :  { %v479_v19 = vmov 683565275   ;;  %v480_v21 = vmov 2475754826   ;;  %v481_v23 = vmov 2131351028  }
   0xd   :  { %v41_v1 = vshrl.u32 %v40_v0, 7  ;;  %v482_v25 = vmov 2102212464   ;;  %v483_v27 = vmov 920167782   ;;  %s486_s0 = smov [#allocation7]  }
   0xe   :  { %v484_v33 = vmov 1326507024   ;;  %s370_s1 = sshll.u32 %s486_s0, 4  ;;  %s372_s21 = sshll.u32 %s561_s2, 4  ;;  %s371_s1 = int_to_ptr.vmem [resolvable:$true] %s370_s1  ;;  %s373_s21 = int_to_ptr.hbm [resolvable:$true] %s372_s21 }
   0xf   :  { %v44_v2 = vmul.u32 8, %v41_v1 }
  0x11   :  { %v45_v3 = vcvt.s32.f32 %v44_v2 }
  0x13   :  { %v47_v6 = vadd.f32 %v46_v4, %v45_v3 }
  0x15   :  { %v509_v7 = vmul.f32 %v48_v5, %v47_v6 }
  0x17   :  { %v53_v8 = vand.u32 2139095040, %v509_v7  ;;  %v50_v10 = vand.u32 2147483647, %v509_v7  ;;  %vm52_vm12 = vcmp.lt.s32.totalorder %v509_v7, 0 }
  0x19   :  { %v54_v9 = vshrl.u32 %v53_v8, 23  ;;  %v57_v13 = vand.u32 8388607, %v50_v10  ;;  %vm51_vm13 = vcmp.le.f32.partialorder %v50_v10, 0.7853982 }
  0x1b   :  { %v383_v11 = vadd.s32 4294967169, %v54_v9  ;;  %v58_v16 = vor.u32 8388608, %v57_v13  ;;  %v485_v9 = vmov 0  }
  0x1d   :  { %v60_v12 = vadd.s32 1, %v383_v11  ;;  %v518_v35 = vshll.u32 %v58_v16, 8 }
  0x1f   :  { %vm61_vm0 = vcmp.gt.s32.totalorder %v60_v12, 0  ;;  %v99_v47 = vand.u32 65535, %v518_v35  ;;  %v100_v48 = vshrl.u32 %v518_v35, 16 }
  0x20   :  { %v62_v14 = vsel %vm61_vm0, %v60_v12, 0 }
  0x21   :  { %v64_v15 = vand.u32 31, %v62_v14  ;;  %v515_v17 = vshrl.u32 %v62_v14, 5 }
  0x23   :  { %v65_v18 = vsub.s32 32, %v64_v15  ;;  %v67_v20 = vshll.u32 %v479_v19, %v64_v15  ;;  %v70_v22 = vshll.u32 %v480_v21, %v64_v15  ;;  %v73_v24 = vshll.u32 %v481_v23, %v64_v15 }
  0x24   :  { %v76_v26 = vshll.u32 %v482_v25, %v64_v15  ;;  %v79_v28 = vshll.u32 %v483_v27, %v64_v15  ;;  %vm82_vm1 = vcmp.lt.s32.totalorder %v515_v17, 1  ;;  %vm85_vm2 = vcmp.lt.s32.totalorder %v515_v17, 4 }
  0x25   :  { %v68_v29 = vshrl.u32 %v480_v21, %v65_v18  ;;  %v71_v30 = vshrl.u32 %v481_v23, %v65_v18  ;;  %v74_v31 = vshrl.u32 %v482_v25, %v65_v18  ;;  %v77_v32 = vshrl.u32 %v483_v27, %v65_v18 }
  0x26   :  { %v80_v34 = vshrl.u32 %v484_v33, %v65_v18  ;;  %vm84_vm3 = vcmp.lt.s32.totalorder %v515_v17, 3  ;;  %vm83_vm4 = vcmp.lt.s32.totalorder %v515_v17, 2  ;;  %v66_v55 = vshrl.u32 %v479_v19, %v65_v18 }
  0x27   :  { %v69_v36 = vor.u32 %v68_v29, %v67_v20  ;;  %v72_v37 = vor.u32 %v71_v30, %v70_v22  ;;  %v75_v38 = vor.u32 %v74_v31, %v73_v24  ;;  %v78_v39 = vor.u32 %v77_v32, %v76_v26 }
  0x28   :  { %v81_v40 = vor.u32 %v80_v34, %v79_v28 }
  0x29   :  { %v90_v41 = vsel %vm82_vm1, %v69_v36, %v72_v37  ;;  %v94_v42 = vsel %vm82_vm1, %v72_v37, %v75_v38  ;;  %v91_v43 = vsel %vm85_vm2, %v78_v39, 920167782  ;;  %v86_v5 = vsel %vm82_vm1, %v66_v55, %v69_v36 }
  0x2a   :  { %v95_v44 = vsel %vm85_vm2, %v81_v40, 1326507024  ;;  %v92_v45 = vsel %vm84_vm3, %v75_v38, %v91_v43  ;;  %v87_v8 = vsel %vm85_vm2, %v75_v38, 2102212464 }
  0x2b   :  { %v96_v46 = vsel %vm84_vm3, %v78_v39, %v95_v44  ;;  %v93_v49 = vsel %vm83_vm4, %v90_v41, %v92_v45  ;;  %v88_v20 = vsel %vm84_vm3, %v72_v37, %v87_v8 }
  0x2c   :  { %v97_v50 = vsel %vm83_vm4, %v94_v42, %v96_v46  ;;  %v123_v53 = vand.u32 65535, %v93_v49  ;;  %v124_v54 = vshrl.u32 %v93_v49, 16  ;;  %v89_v28 = vsel %vm83_vm4, %v86_v5, %v88_v20 }
  0x2d   :  { %v101_v51 = vand.u32 65535, %v97_v50  ;;  %v102_v52 = vshrl.u32 %v97_v50, 16  ;;  %v143_v32 = vmul.u32 %v518_v35, %v89_v28  ;;  %vm193_vm4 = vweird.f32 %v509_v7 }
  0x2e   :  { %v125_v59 = vmul.u32 %v123_v53, %v99_v47  ;;  %v126_v60 = vmul.u32 %v124_v54, %v99_v47  ;;  %v127_v61 = vmul.u32 %v123_v53, %v100_v48  ;;  %v128_v2 = vmul.u32 %v124_v54, %v100_v48 }
  0x2f   :  { %v103_v56 = vmul.u32 %v101_v51, %v99_v47  ;;  %v104_v57 = vmul.u32 %v102_v52, %v99_v47  ;;  %v105_v58 = vmul.u32 %v101_v51, %v100_v48  ;;  %v106_v62 = vmul.u32 %v102_v52, %v100_v48 }
  0x30   :  { %v129_v3 = vshll.u32 %v126_v60, 16  ;;  %v131_v4 = vshll.u32 %v127_v61, 16  ;;  %v130_v18 = vshrl.u32 %v126_v60, 16  ;;  %v132_v24 = vshrl.u32 %v127_v61, 16 }
  0x31   :  { %v107_v63 = vshll.u32 %v104_v57, 16  ;;  %v109_v1 = vshll.u32 %v105_v58, 16  ;;  %v108_v13 = vshrl.u32 %v104_v57, 16  ;;  %v110_v21 = vshrl.u32 %v105_v58, 16 }
  0x32   :  { %vm133_vm6 = vc.u32 %v125_v59, %v129_v3  ;;  %v135_v12 = vadd.s32 %v129_v3, %v125_v59 }
  0x33   :  { %vm111_vm5 = vc.u32 %v103_v56, %v107_v63  ;;  %v113_v6 = vadd.s32 %v107_v63, %v103_v56  ;;  %v134_v15 = vsel %vm133_vm6, 1, %v485_v9 }
  0x34   :  { %v112_v11 = vsel %vm111_vm5, 1, %v485_v9  ;;  %v136_v19 = vadd.s32 %v134_v15, %v128_v2  ;;  %vm137_vm8 = vc.u32 %v135_v12, %v131_v4  ;;  %v139_v27 = vadd.s32 %v135_v12, %v131_v4 }
  0x35   :  { %v114_v14 = vadd.s32 %v112_v11, %v106_v62  ;;  %vm115_vm7 = vc.u32 %v113_v6, %v109_v1  ;;  %v138_v23 = vsel %vm137_vm8, 1, %v485_v9  ;;  %vm207_vm5 = vcmp.lt.s32.totalorder %v40_v0, 128 }
  0x36   :  { %v116_v16 = vsel %vm115_vm7, 1, %v485_v9  ;;  %v140_v25 = vadd.s32 %v138_v23, %v136_v19 }
  0x37   :  { %v118_v22 = vadd.s32 %v116_v16, %v114_v14 }
  0x38   :  { %v141_v29 = vadd.s32 %v140_v25, %v130_v18 }
  0x39   :  { %v119_v26 = vadd.s32 %v118_v22, %v108_v13 }
  0x3a   :  { %v142_v31 = vadd.s32 %v141_v29, %v132_v24 }
  0x3b   :  { %v120_v30 = vadd.s32 %v119_v26, %v110_v21 }
  0x3c   :  { %v146_v33 = vadd.s32 1, %v142_v31 }
  0x3d   :  { %vm145_vm9 = vc.u32 %v120_v30, %v139_v27  ;;  %v144_v17 = vadd.s32 %v139_v27, %v120_v30 }
  0x3e   :  { %v147_v34 = vsel %vm145_vm9, %v146_v33, %v142_v31 }
  0x3f   :  { %v148_v36 = vadd.s32 %v147_v34, %v143_v32 }
  0x41   :  { %v149_v37 = vadd.s32 536870912, %v148_v36 }
  0x43   :  { %v150_v38 = vshrl.u32 %v149_v37, 30 }
  0x45   :  { %v151_v39 = vshll.u32 %v150_v38, 30  ;;  %v174_v56 = vsub.s32 4, %v150_v38 }
  0x47   :  { %v152_v40 = vsub.s32 %v148_v36, %v151_v39  ;;  %v175_v59 = vsel %vm52_vm12, %v174_v56, %v150_v38 }
  0x48   :  { %v177_v62 = vsel %vm51_vm13, 0, %v175_v59 }
  0x49   :  { %vm153_vm10 = vcmp.lt.s32.totalorder %v152_v40, 0  ;;  %v154_v41 = vsub.s32 0, %v152_v40  ;;  %v194_v4 = vadd.s32 3, %v177_v62  ;;  %v354_v12 = vand.u32 3, %v177_v62 }
  0x4b   :  { %v155_v42 = vsel %vm153_vm10, %v154_v41, %v152_v40  ;;  %v195_v11 = vand.u32 3, %v194_v4  ;;  %vm359_vm15 = vcmp.eq.s32.totalorder %v354_v12, 2  ;;  %vm356_vm2 = vcmp.eq.s32.totalorder %v354_v12, 0 }
  0x4c   :  { %v156_v43 = vclz %v155_v42  ;;  %vm355_vm3 = vcmp.lt.s32.totalorder %v354_v12, 2 }
  0x4d   :  { %vm200_vm14 = vcmp.eq.s32.totalorder %v195_v11, 2  ;;  %vm196_vm0 = vcmp.lt.s32.totalorder %v195_v11, 2  ;;  %vm197_vm1 = vcmp.eq.s32.totalorder %v195_v11, 0 }
  0x4e   :  { %v384_v44 = vadd.s32 4294967294, %v156_v43 }
  0x50   :  { %vm385_vm11 = vcmp.lt.s32.totalorder %v384_v44, 0 }
  0x51   :  { %v159_v45 = vsel %vm385_vm11, 0, %v384_v44 }
  0x52   :  { %v160_v46 = vsub.s32 32, %v159_v45  ;;  %v161_v47 = vshll.u32 %v152_v40, %v159_v45  ;;  %v164_v48 = vsub.s32 4294967266, %v159_v45 }
  0x54   :  { %v162_v35 = vshrl.u32 %v144_v17, %v160_v46  ;;  %v165_v49 = vadd.s32 127, %v164_v48 }
  0x56   :  { %v163_v50 = vor.u32 %v162_v35, %v161_v47  ;;  %v166_v51 = vshll.u32 %v165_v49, 23 }
  0x58   :  { %v167_v52 = vor.u32 4788187, %v166_v51  ;;  %v170_v53 = vcvt.s32.f32 %v163_v50 }
  0x5a   :  { %v168_v54 = vand.u32 2147483647, %v167_v52 }
  0x5c   :  { %v171_v55 = vmul.f32 %v170_v53, %v168_v54 }
  0x5e   :  { %v172_v57 = vxor.u32 2147483648, %v171_v55 }
  0x60   :  { %v173_v58 = vsel %vm52_vm12, %v172_v57, %v171_v55 }
  0x61   :  { %v176_v60 = vsel %vm51_vm13, %v509_v7, %v173_v58 }
  0x62   :  { %v178_v61 = vmul.f32 %v176_v60, %v176_v60 }
  0x64   :  { %v179_v63 = vmul.f32 -0.001358992, %v178_v61  ;;  %v186_v1 = vmul.f32 -0.00019511016, %v178_v61 }
  0x66   :  { %v180_v2 = vadd.f32 0.041655596, %v179_v63  ;;  %v187_v3 = vadd.f32 0.008332121, %v186_v1 }
  0x68   :  { %v181_v5 = vmul.f32 %v180_v2, %v178_v61  ;;  %v188_v6 = vmul.f32 %v187_v3, %v178_v61 }
  0x6a   :  { %v182_v8 = vadd.f32 -0.4999988, %v181_v5  ;;  %v189_v9 = vadd.f32 -0.16666654, %v188_v6 }
  0x6c   :  { %v183_v13 = vmul.f32 %v182_v8, %v178_v61  ;;  %v190_v10 = vmul.f32 %v189_v9, %v178_v61 }
  0x6e   :  { %v184_v14 = vadd.f32 1.0, %v183_v13  ;;  %v191_v15 = vadd.f32 1.0, %v190_v10 }
  0x70   :  { %v192_v16 = vmul.f32 %v191_v15, %v176_v60  ;;  %v201_v18 = vxor.u32 2147483648, %v184_v14 }
  0x72   :  { %v198_v19 = vxor.u32 2147483648, %v192_v16  ;;  %v202_v20 = vsel %vm200_vm14, %v201_v18, %v192_v16  ;;  %v361_v21 = vsel %vm359_vm15, %v201_v18, %v192_v16 }
  0x74   :  { %v199_v22 = vsel %vm197_vm1, %v184_v14, %v198_v19  ;;  %v358_v23 = vsel %vm356_vm2, %v184_v14, %v198_v19 }
  0x75   :  { %v203_v24 = vsel %vm196_vm0, %v199_v22, %v202_v20  ;;  %v362_v25 = vsel %vm355_vm3, %v358_v23, %v361_v21 }
  0x76   :  { %v204_v26 = vsel %vm193_vm4, nan, %v203_v24  ;;  %v363_v27 = vsel %vm193_vm4, nan, %v362_v25 }
  0x77   :  { %209 = vst.msk [vmem:[#allocation7] sm:$0x1] %vm207_vm5, %v204_v26 }
  0x78   :  { %364 = vst.msk [vmem:[#allocation7 + $0x1] sm:$0x1] %vm207_vm5, %v363_v27 }
  0x79   :  { %375 = dma.vmem_to_hbm [thread:$0]  %s371_s1, 32, %s373_s21, [#allocation4]  }
  0x7a   :  { %475 = dma.done.wait [#allocation4], 32  }
  0x7b   :  { %476 = vsyncadd [#allocation4], 4294967264 }
  0x7c   :  { %380 = vsyncpa [#allocation3], 1 }
  0x7d   :  { %381 = vsyncpa [#allocation6], 1 }
  0x7e   :  { %382 = vsyncpa [#allocation4], 1 }

</bundles_post_ra>
